<compile_context>
chip_gen: v6e
topology: v6e:2x2x1
jax: 0.10.0
libtpu: 0.0.40
codegen_flags: <defaults>
</compile_context>

<pallas_src>
import jax
import jax.numpy as jnp
from jax.experimental import pallas as pl
from jax.experimental.pallas import tpu as pltpu


OUT_PAD = 8  # second Linear's 3 outputs padded to 8 lanes (full-dim block => legal)


def _round_up(x, m):
    return ((x + m - 1) // m) * m


def _mlp_kernel(x_ref, w1_ref, b1_ref, w2_ref, b2_ref, o_ref):
    # x_ref:  [TB, F_pad]    f32   (batch tile of flattened input)
    # w1_ref: [F_pad, H]     bf16  (VMEM-resident across grid)
    # b1_ref: [1, H]         f32
    # w2_ref: [H, OUT_PAD]   bf16  (zero-padded from [H, 3])
    # b2_ref: [1, OUT_PAD]   f32   (zero-padded from [1, 3])
    # o_ref:  [TB, OUT_PAD]  f32
    x_bf = x_ref[...].astype(jnp.bfloat16)            # cast in-kernel (VPU, free slot)
    h = jnp.dot(x_bf, w1_ref[...], preferred_element_type=jnp.float32)
    h = jnp.maximum(h + b1_ref[...], 0.0)             # bias + ReLU in f32
    # Dropout(0.3): identity at inference time.
    out = jnp.dot(h.astype(jnp.bfloat16), w2_ref[...],
                  preferred_element_type=jnp.float32) + b2_ref[...]
    o_ref[...] = out


def prepare_params(w1, b1, w2, b2):
    """Pad/cast the weights into kernel layout ONCE (amortized across calls)."""
    F, H = w1.shape
    out_dim = w2.shape[1]
    F_pad = _round_up(F, 128)
    w1p = jnp.pad(w1, ((0, F_pad - F), (0, 0))).astype(jnp.bfloat16)
    b1p = jnp.asarray(b1, jnp.float32).reshape(1, H)
    w2p = jnp.pad(w2, ((0, 0), (0, OUT_PAD - out_dim))).astype(jnp.bfloat16)
    b2p = jnp.pad(jnp.asarray(b2, jnp.float32).reshape(1, out_dim),
                  ((0, 0), (0, OUT_PAD - out_dim)))
    return {"w1": w1p, "b1": b1p, "w2": w2p, "b2": b2p,
            "F": F, "F_pad": F_pad, "H": H, "out_dim": out_dim}


def camera_pose_regressor(x_nchw, params, *, block_b=1024):
    """x_nchw: [B, C, 8, 8] float32; params from prepare_params(). Returns [B, 3]."""
    B = x_nchw.shape[0]
    F, F_pad, H, out_dim = params["F"], params["F_pad"], params["H"], params["out_dim"]

    x_flat = jnp.asarray(x_nchw, jnp.float32).reshape(B, -1)   # nn.Flatten on NCHW
    assert x_flat.shape[1] == F, "input spatial must be 8x8 (Linear expects C*8*8)"
    if F_pad != F:  # only pads when C*64 is not a multiple of 128
        x_flat = jnp.pad(x_flat, ((0, 0), (0, F_pad - F)))

    # Batch tiling: multiple of 16 (bf16 sublane packing). If the whole batch fits
    # in one tile and is big enough, split into 2 balanced tiles so the "parallel"
    # axis can shard across both v7x TensorCores.
    block_b = max(16, _round_up(block_b, 16))
    B16 = _round_up(B, 16)
    if B16 <= block_b:
        TB = _round_up(-(-B16 // 2), 16) if B16 >= 32 else B16
    else:
        TB = block_b
    B_pad = _round_up(B, TB)
    if B_pad != B:
        # Padded rows compute ReLU(b1)@w2+b2 garbage; they are sliced off below
        # and must never be reduced over before slicing.
        x_flat = jnp.pad(x_flat, ((0, B_pad - B), (0, 0)))

    grid = (B_pad // TB,)

    # VMEM budget (double-buffered x/out, resident weights) with headroom,
    # clamped to v7x's 64 MiB physical per-TC capacity.
    est_bytes = (2 * TB * F_pad * 4            # x tiles (f32, double-buffered)
                 + 2 * F_pad * H * 2           # w1 (bf16)
                 + 2 * 8 * max(H, 128) * 4     # b1 (sublane/lane padded)
                 + 2 * max(H, 8) * 128 * 2     # w2 (lane padded layout)
                 + 2 * 8 * 128 * 4             # b2
                 + 2 * TB * 128 * 4)           # out tiles (lane padded layout)
    vmem_limit = int(min(max(2 * est_bytes, 32 << 20), 64 << 20))

    cost = pl.CostEstimate(
        flops=2 * B_pad * F_pad * H + 2 * B_pad * H * OUT_PAD,
        transcendentals=0,
        bytes_accessed=(B_pad * F_pad * 4 + F_pad * H * 2 + H * 4
                        + H * OUT_PAD * 2 + OUT_PAD * 4 + B_pad * OUT_PAD * 4),
    )

    out_padded = pl.pallas_call(
        _mlp_kernel,
        out_shape=jax.ShapeDtypeStruct((B_pad, OUT_PAD), jnp.float32),
        grid=grid,
        in_specs=[
            pl.BlockSpec((TB, F_pad), lambda i: (i, 0)),      # x: tiled over batch
            pl.BlockSpec((F_pad, H), lambda i: (0, 0)),       # w1: resident
            pl.BlockSpec((1, H), lambda i: (0, 0)),           # b1: resident
            pl.BlockSpec((H, OUT_PAD), lambda i: (0, 0)),     # w2: resident
            pl.BlockSpec((1, OUT_PAD), lambda i: (0, 0)),     # b2: resident
        ],
        out_specs=pl.BlockSpec((TB, OUT_PAD), lambda i: (i, 0)),
        compiler_params=pltpu.CompilerParams(
            dimension_semantics=("parallel",),
            vmem_limit_bytes=vmem_limit,
        ),
        cost_estimate=cost,
    )(x_flat, params["w1"], params["b1"], params["w2"], params["b2"])

    # Slice off batch padding and the 5 zero output lanes outside the kernel.
    return out_padded[:B, :out_dim]


def init_params(key, input_channels, hidden_dim):
    """PyTorch Linear-style init; weights stored transposed as [in, out]."""
    F = input_channels * 8 * 8
    k1, k2, k3, k4 = jax.random.split(key, 4)
    lim1 = 1.0 / jnp.sqrt(F)
    lim2 = 1.0 / jnp.sqrt(hidden_dim)
    w1 = jax.random.uniform(k1, (F, hidden_dim), jnp.float32, -lim1, lim1)
    b1 = jax.random.uniform(k2, (1, hidden_dim), jnp.float32, -lim1, lim1)
    w2 = jax.random.uniform(k3, (hidden_dim, 3), jnp.float32, -lim2, lim2)
    b2 = jax.random.uniform(k4, (1, 3), jnp.float32, -lim2, lim2)
    return w1, b1, w2, b2


if __name__ == "__main__":
    key = jax.random.PRNGKey(0)
    kx, kp = jax.random.split(key)

    # Spatial must be 8x8 (Linear expects C*8*8); hidden_dim=256 is the module default.
    B, C, Hs, Ws = 2, 4, 8, 8
    hidden_dim = 256

    x = jax.random.normal(kx, (B, C, Hs, Ws), jnp.float32)
    w1, b1, w2, b2 = init_params(kp, C, hidden_dim)

    # Weight prep happens once, outside the per-call path (amortized for serving).
    params = prepare_params(w1, b1, w2, b2)

    out = camera_pose_regressor(x, params)
    out = jax.block_until_ready(out)

    # True f32 reference (PyTorch eval-mode forward: dropout = identity).
    x_flat = x.reshape(B, -1)
    ref = jnp.maximum(x_flat @ w1 + b1, 0.0) @ w2 + b2

    assert out.shape == (B, 3)
    assert jnp.allclose(out, ref, atol=3e-2, rtol=3e-2), "mismatch vs f32 reference"

    print("KERNEL_OK")
</pallas_src>

<mosaic_0001>
module attributes {stable_mosaic.version = 11 : i64} {
  func.func @_mlp_kernel(%arg0: i32, %arg1: memref<16x256xf32, #tpu.memory_space<vmem>>, %arg2: memref<256x256xbf16, #tpu.memory_space<vmem>>, %arg3: memref<1x256xf32, #tpu.memory_space<vmem>>, %arg4: memref<256x8xbf16, #tpu.memory_space<vmem>>, %arg5: memref<1x8xf32, #tpu.memory_space<vmem>>, %arg6: memref<16x8xf32, #tpu.memory_space<vmem>>) attributes {dimension_semantics = [#tpu.dimension_semantics<parallel>], iteration_bounds = array<i64: 1>, scalar_prefetch = 0 : i64, scratch_operands = 0 : i64, tpu.core_type = #tpu.core_type<tc>, window_params = [{transform_indices = @transform_0, window_bounds = array<i64: 16, 256>}, {pipeline_mode = #tpu.pipeline_mode<synchronous>, transform_indices = @transform_1, window_bounds = array<i64: 256, 256>}, {pipeline_mode = #tpu.pipeline_mode<synchronous>, transform_indices = @transform_2, window_bounds = array<i64: 1, 256>}, {pipeline_mode = #tpu.pipeline_mode<synchronous>, transform_indices = @transform_3, window_bounds = array<i64: 256, 8>}, {pipeline_mode = #tpu.pipeline_mode<synchronous>, transform_indices = @transform_4, window_bounds = array<i64: 1, 8>}, {transform_indices = @transform_5, window_bounds = array<i64: 16, 8>}]} {
    %c0 = arith.constant 0 : index
    %c0_0 = arith.constant 0 : index
    %0 = vector.load %arg1[%c0, %c0_0] : memref<16x256xf32, #tpu.memory_space<vmem>>, vector<16x256xf32>
    %1 = arith.truncf %0 : vector<16x256xf32> to vector<16x256xbf16>
    %c0_1 = arith.constant 0 : index
    %c0_2 = arith.constant 0 : index
    %2 = vector.load %arg2[%c0_1, %c0_2] : memref<256x256xbf16, #tpu.memory_space<vmem>>, vector<256x256xbf16>
    %cst = arith.constant dense<0.000000e+00> : vector<16x256xf32>
    %3 = tpu.matmul %1, %2, %cst {dimension_numbers = #tpu.dot_dimension_numbers<[1], [0], [0], [1], [0, 0, 1, 1], [], []>} : vector<16x256xbf16>, vector<256x256xbf16>, vector<16x256xf32> -> vector<16x256xf32>
    %c0_3 = arith.constant 0 : index
    %c0_4 = arith.constant 0 : index
    %4 = vector.load %arg3[%c0_3, %c0_4] : memref<1x256xf32, #tpu.memory_space<vmem>>, vector<1x256xf32>
    %5 = vector.broadcast %4 : vector<1x256xf32> to vector<16x256xf32>
    %6 = arith.addf %3, %5 : vector<16x256xf32>
    %cst_5 = arith.constant 0.000000e+00 : f32
    %7 = vector.broadcast %cst_5 : f32 to vector<16x256xf32>
    %8 = arith.maximumf %6, %7 : vector<16x256xf32>
    %9 = arith.truncf %8 : vector<16x256xf32> to vector<16x256xbf16>
    %c0_6 = arith.constant 0 : index
    %c0_7 = arith.constant 0 : index
    %10 = vector.load %arg4[%c0_6, %c0_7] : memref<256x8xbf16, #tpu.memory_space<vmem>>, vector<256x8xbf16>
    %cst_8 = arith.constant dense<0.000000e+00> : vector<16x8xf32>
    %11 = tpu.matmul %9, %10, %cst_8 {dimension_numbers = #tpu.dot_dimension_numbers<[1], [0], [0], [1], [0, 0, 1, 1], [], []>} : vector<16x256xbf16>, vector<256x8xbf16>, vector<16x8xf32> -> vector<16x8xf32>
    %c0_9 = arith.constant 0 : index
    %c0_10 = arith.constant 0 : index
    %12 = vector.load %arg5[%c0_9, %c0_10] : memref<1x8xf32, #tpu.memory_space<vmem>>, vector<1x8xf32>
    %13 = vector.broadcast %12 : vector<1x8xf32> to vector<16x8xf32>
    %14 = arith.addf %11, %13 : vector<16x8xf32>
    %c0_11 = arith.constant 0 : index
    %c0_12 = arith.constant 0 : index
    %15 = vector.load %arg6[%c0_11, %c0_12] : memref<16x8xf32, #tpu.memory_space<vmem>>, vector<16x8xf32>
    tpu.vector_store %arg6[%c0_11, %c0_12], %14 {strides = array<i32>} : memref<16x8xf32, #tpu.memory_space<vmem>>, vector<16x8xf32>,
    return
  }
  func.func @transform_0(%arg0: i32) -> (i32, i32) {
    %c0_i32 = arith.constant 0 : i32
    %c0_i32_0 = arith.constant 0 : i32
    return %arg0, %c0_i32 : i32, i32
  }
  func.func @transform_1(%arg0: i32) -> (i32, i32) {
    %c0_i32 = arith.constant 0 : i32
    %c0_i32_0 = arith.constant 0 : i32
    %c0_i32_1 = arith.constant 0 : i32
    return %c0_i32, %c0_i32_0 : i32, i32
  }
  func.func @transform_2(%arg0: i32) -> (i32, i32) {
    %c0_i32 = arith.constant 0 : i32
    %c0_i32_0 = arith.constant 0 : i32
    %c0_i32_1 = arith.constant 0 : i32
    return %c0_i32, %c0_i32_0 : i32, i32
  }
  func.func @transform_3(%arg0: i32) -> (i32, i32) {
    %c0_i32 = arith.constant 0 : i32
    %c0_i32_0 = arith.constant 0 : i32
    %c0_i32_1 = arith.constant 0 : i32
    return %c0_i32, %c0_i32_0 : i32, i32
  }
  func.func @transform_4(%arg0: i32) -> (i32, i32) {
    %c0_i32 = arith.constant 0 : i32
    %c0_i32_0 = arith.constant 0 : i32
    %c0_i32_1 = arith.constant 0 : i32
    return %c0_i32, %c0_i32_0 : i32, i32
  }
  func.func @transform_5(%arg0: i32) -> (i32, i32) {
    %c0_i32 = arith.constant 0 : i32
    %c0_i32_0 = arith.constant 0 : i32
    return %arg0, %c0_i32 : i32, i32
  }
}

</mosaic_0001>

<bundles_post_ra>
// kernel: tpu_custom_call.1
= control target key start
LH: loop header
LB: loop body
LE: loop exit
PB: predicated region body
PF: predicated region fallthrough
CT: control target
= control target key end

     0   :  { %10 = vsyncpa [#allocation3], 0  ;;  %s638_s18 = smov [#allocation2]   ;;  %s746_s0 = inlined_call_operand.vmem [shape: f32[16,256], index: 0, kind: input, shape index: {}]   ;;  %s747_s1 = inlined_call_operand.hbm [shape: bf16[256,256], index: 1, kind: input, shape index: {}]   ;;  %s748_s2 = inlined_call_operand.vmem [shape: f32[1,256], index: 2, kind: input, shape index: {}]   ;;  %s749_s3 = inlined_call_operand.vmem [shape: bf16[256,8], index: 3, kind: input, shape index: {}]   ;;  %s750_s4 = inlined_call_operand.vmem [shape: f32[1,8], index: 4, kind: input, shape index: {}]   ;;  %s751_s5 = inlined_call_operand.vmem [shape: f32[16,8], index: 5, kind: output, shape index: {}]  }
   0x1   :  { %s18_s19 = sshll.u32 %s638_s18, 4  ;;  %s19_s19 = int_to_ptr.vmem [resolvable:$true] %s18_s19 }
   0x2   :  { %s624_s20 = scalar_lea.vmem %s19_s19, 4096  ;;  %p629_p1 = scmp.lt.s32.totalorder %s19_s19, %s19_s19 }
   0x3   :  { %p625_p0 = scmp.ne.s32.totalorder %s19_s19, %s624_s20  ;;  %p630_p2 = scmp.lt.s32.totalorder %s624_s20, %s624_s20 }
   0x5   :  { %p631_p3 = por %p630_p2, %p629_p1 }
   0x7   :  { %p632_p4 = pnand %p631_p3, %p625_p0 }
   0x9   :  { %635 = shalt.err (!%p632_p4)
}
   0xa   :  { %s639_s21 = smov 128   ;;  %s640_s22 = smov 8  }
   0xb   :  { %24 = dma.hbm_to_vmem [thread:$0]  %s747_s1, 4096, %s19_s19, [#allocation3], %s639_s21, %s639_s21, %s640_s22  }
   0xc   :  { %636 = dma.done.wait [#allocation3], 4096  }
   0xd   :  { %637 = vsyncadd [#allocation3], 4294963200  ;;  %v552_v0 = vld [vmem:[#allocation2 + $0x74] ss:$8 sps:$4 sm:$0xff]   ;;  %v554_v1 = vld [vmem:[#allocation2 + $0x70] ss:$8 sps:$4 sm:$0xff]   ;;  %v75_v54 = vlaneseq }
   0xe   :  { %245 = vmatprep.subr.bf16.mxu0 %v552_v0  ;;  %v555_v2 = vld [vmem:[#allocation2 + $0x64] ss:$8 sps:$4 sm:$0xff]   ;;  %v557_v3 = vld [vmem:[#allocation2 + $0x60] ss:$8 sps:$4 sm:$0xff]   ;;  %v558_v4 = vld [vmem:[#allocation2 + $0x54] ss:$8 sps:$4 sm:$0xff]  }
   0xf   :  { %246 = vmatpush1.bf16.msra.mxu0 %v554_v1  ;;  %v560_v5 = vld [vmem:[#allocation2 + $0x50] ss:$8 sps:$4 sm:$0xff]   ;;  %v561_v6 = vld [vmem:[#allocation2 + $0x44] ss:$8 sps:$4 sm:$0xff]   ;;  %v563_v7 = vld [vmem:[#allocation2 + $0x40] ss:$8 sps:$4 sm:$0xff]  }
  0x10   :  { %247 = vmatprep.subr.bf16.mxu0 %v555_v2  ;;  %v564_v8 = vld [vmem:[#allocation2 + $0x34] ss:$8 sps:$4 sm:$0xff]   ;;  %v566_v9 = vld [vmem:[#allocation2 + $0x30] ss:$8 sps:$4 sm:$0xff]   ;;  %v567_v10 = vld [vmem:[#allocation2 + $0x24] ss:$8 sps:$4 sm:$0xff]  }
  0x11   :  { %v569_v11 = vld [vmem:[#allocation2 + $0x20] ss:$8 sps:$4 sm:$0xff]   ;;  %v570_v12 = vld [vmem:[#allocation2 + $0x14] ss:$8 sps:$4 sm:$0xff]   ;;  %v572_v15 = vld [vmem:[#allocation2 + $0x10] ss:$8 sps:$4 sm:$0xff]  }
  0x12   :  { %v36_v13 = vld [vmem:[%s746_s0 + $0x8] sm:$0xff]  ;;  %v38_v14 = vld [vmem:[%s746_s0 + $0x18] sm:$0xff]  ;;  %v602_v21 = vld [vmem:[%s749_s3 + $0x70] sm:$0xff]   ;;  %v76_v55 = vshrl.u32 %v75_v54, 7  ;;  %vm470_vm0 = vcmask 64512  }
  0x13   :  { %248 = vmatpush1.bf16.msra.mxu0 %v557_v3  ;;  %v573_v16 = vld [vmem:[#allocation2 + $0x4] ss:$8 sps:$4 sm:$0xff]   ;;  %v40_v17 = vpack.c.bf16 %v38_v14, %v36_v13  ;;  %v600_v18 = vld [vmem:[%s749_s3 + $0x78] sm:$0xff]   ;;  %v575_v20 = vld [vmem:[#allocation2] ss:$8 sps:$4 sm:$0xff]  }
  0x14   :  { %249 = vmatprep.subr.bf16.mxu0 %v558_v4  ;;  %v601_v19 = vld [vmem:[%s749_s3 + $0x38] sm:$0xff]   ;;  %527 = vmatprep.subr.bf16.mxu1 %v600_v18  ;;  %v603_v22 = vld [vmem:[%s749_s3 + $0x30] sm:$0xff]   ;;  %v604_v23 = vld [vmem:[%s749_s3 + $0x68] sm:$0xff]   ;;  %v81_v56 = vsub.s32 1, %v76_v55  ;;  %v77_v57 = vsub.s32 0, %v76_v55 }
  0x15   :  { %277 = vmatprep.mubr.bf16.mxu0 %v40_v17  ;;  %528 = vmatpush3.bf16.msra.mxu1 %v601_v19  ;;  %v576_v24 = vld [vmem:[#allocation2 + $0xf4] ss:$8 sps:$4 sm:$0xff]   ;;  %v578_v25 = vld [vmem:[#allocation2 + $0xf0] ss:$8 sps:$4 sm:$0xff]   ;;  %v605_v26 = vld [vmem:[%s749_s3 + $0x28] sm:$0xff]  }
  0x16   :  { %529 = vmatprep.subr.bf16.mxu1 %v602_v21  ;;  %v606_v27 = vld [vmem:[%s749_s3 + $0x60] sm:$0xff]   ;;  %v608_v31 = vld [vmem:[%s749_s3 + $0x58] sm:$0xff]   ;;  %v37_v46 = vld [vmem:[%s746_s0 + $0x10] sm:$0xff] }
  0x17   :  { %250 = vmatpush1.bf16.msra.mxu0 %v560_v5  ;;  %v579_v28 = vld [vmem:[#allocation2 + $0xe4] ss:$8 sps:$4 sm:$0xff]   ;;  %v581_v30 = vld [vmem:[#allocation2 + $0xe0] ss:$8 sps:$4 sm:$0xff]   ;;  %v582_v32 = vld [vmem:[#allocation2 + $0xd4] ss:$8 sps:$4 sm:$0xff]  }
  0x18   :  { %251 = vmatprep.subr.bf16.mxu0 %v561_v6  ;;  %v607_v29 = vld [vmem:[%s749_s3 + $0x20] sm:$0xff]   ;;  %v609_v33 = vld [vmem:[%s749_s3 + $0x18] sm:$0xff]   ;;  %v610_v48 = vld [vmem:[%s749_s3 + $0x50] sm:$0xff]  }
  0x19   :  { %530 = vmatpush3.bf16.msra.mxu1 %v603_v22  ;;  %v584_v34 = vld [vmem:[#allocation2 + $0xd0] ss:$8 sps:$4 sm:$0xff]   ;;  %v585_v35 = vld [vmem:[#allocation2 + $0xc4] ss:$8 sps:$4 sm:$0xff]   ;;  %v587_v36 = vld [vmem:[#allocation2 + $0xc0] ss:$8 sps:$4 sm:$0xff]  }
  0x1a   :  { %531 = vmatprep.subr.bf16.mxu1 %v604_v23  ;;  %v588_v37 = vld [vmem:[#allocation2 + $0xb4] ss:$8 sps:$4 sm:$0xff]   ;;  %v590_v38 = vld [vmem:[#allocation2 + $0xb0] ss:$8 sps:$4 sm:$0xff]   ;;  %v591_v39 = vld [vmem:[#allocation2 + $0xa4] ss:$8 sps:$4 sm:$0xff]  }
  0x1b   :  { %252 = vmatpush1.bf16.msra.mxu0 %v563_v7  ;;  %v593_v40 = vld [vmem:[#allocation2 + $0xa0] ss:$8 sps:$4 sm:$0xff]   ;;  %v594_v41 = vld [vmem:[#allocation2 + $0x94] ss:$8 sps:$4 sm:$0xff]   ;;  %v596_v42 = vld [vmem:[#allocation2 + $0x90] ss:$8 sps:$4 sm:$0xff]  }
  0x1c   :  { %253 = vmatprep.subr.bf16.mxu0 %v564_v8  ;;  %v597_v43 = vld [vmem:[#allocation2 + $0x84] ss:$8 sps:$4 sm:$0xff]   ;;  %v599_v44 = vld [vmem:[#allocation2 + $0x80] ss:$8 sps:$4 sm:$0xff]   ;;  %v611_v49 = vld [vmem:[%s749_s3 + $0x10] sm:$0xff]  }
  0x1d   :  { %532 = vmatpush3.bf16.msra.mxu1 %v605_v26  ;;  %v35_v45 = vld [vmem:[%s746_s0] sm:$0xff]  ;;  %v612_v50 = vld [vmem:[%s749_s3 + $0x48] sm:$0xff]  }
  0x1e   :  { %533 = vmatprep.subr.bf16.mxu1 %v606_v27  ;;  %v39_v47 = vpack.c.bf16 %v37_v46, %v35_v45  ;;  %v613_v51 = vld [vmem:[%s749_s3 + $0x8] sm:$0xff]   ;;  %v614_v52 = vld [vmem:[%s749_s3 + $0x40] sm:$0xff]  }
  0x1f   :  { %254 = vmatpush1.bf16.msra.mxu0 %v566_v9  ;;  %v615_v53 = vld [vmem:[%s749_s3] sm:$0xff]  }
  0x20   :  { %255 = vmatprep.subr.bf16.mxu0 %v567_v10  ;;  %v73_v58 = vld [vmem:[%s748_s2] sm:$0x3] }
  0x21   :  { %534 = vmatpush3.bf16.msra.mxu1 %v607_v29  ;;  %v82_v60 = vrot.slane %v73_v58, %v81_v56  ;;  %v78_v61 = vrot.slane %v73_v58, %v77_v57 }
  0x22   :  { %535 = vmatprep.subr.bf16.mxu1 %v608_v31 }
  0x23   :  { %256 = vmatpush1.bf16.msra.mxu0 %v569_v11 }
  0x24   :  { %257 = vmatprep.subr.bf16.mxu0 %v570_v12  ;;  %v510_v12 = vld [vmem:[%s750_s4] ss:$0 sm:$0xff] }
  0x25   :  { %536 = vmatpush3.bf16.msra.mxu1 %v609_v33 }
  0x26   :  { %537 = vmatprep.subr.bf16.mxu1 %v610_v48 }
  0x27   :  { %258 = vmatpush1.bf16.msra.mxu0 %v572_v15 }
  0x28   :  { %259 = vmatprep.subr.bf16.mxu0 %v573_v16 }
  0x29   :  { %538 = vmatpush3.bf16.msra.mxu1 %v611_v49 }
  0x2a   :  { %539 = vmatprep.subr.bf16.mxu1 %v612_v50 }
  0x2b   :  { %260 = vmatpush1.bf16.msra.mxu0 %v575_v20 }
  0x2c   :  { %261 = vmatprep.subr.bf16.mxu0 %v576_v24 }
  0x2d   :  { %540 = vmatpush3.bf16.msra.mxu1 %v613_v51 }
  0x2e   :  { %541 = vmatprep.subr.bf16.mxu1 %v614_v52 }
  0x2f   :  { %262 = vmatpush2.bf16.msra.mxu0 %v578_v25 }
  0x30   :  { %263 = vmatprep.subr.bf16.mxu0 %v579_v28 }
  0x31   :  { %542 = vmatpush3.bf16.msra.mxu1 %v615_v53 }
  0x33   :  { %264 = vmatpush2.bf16.msra.mxu0 %v581_v30 }
  0x34   :  { %265 = vmatprep.subr.bf16.mxu0 %v582_v32 }
  0x37   :  { %266 = vmatpush2.bf16.msra.mxu0 %v584_v34 }
  0x38   :  { %267 = vmatprep.subr.bf16.mxu0 %v585_v35 }
  0x3b   :  { %268 = vmatpush2.bf16.msra.mxu0 %v587_v36 }
  0x3c   :  { %269 = vmatprep.subr.bf16.mxu0 %v588_v37 }
  0x3f   :  { %270 = vmatpush2.bf16.msra.mxu0 %v590_v38 }
  0x40   :  { %271 = vmatprep.subr.bf16.mxu0 %v591_v39 }
  0x43   :  { %272 = vmatpush2.bf16.msra.mxu0 %v593_v40 }
  0x44   :  { %273 = vmatprep.subr.bf16.mxu0 %v594_v41 }
  0x47   :  { %274 = vmatpush2.bf16.msra.mxu0 %v596_v42 }
  0x48   :  { %275 = vmatprep.subr.bf16.mxu0 %v597_v43 }
  0x4b   :  { %276 = vmatpush2.bf16.msra.mxu0 %v599_v44 }
  0x4e   :  { %278 = vmatmul.mubr.bf16.vlgmr.msra.gmra.mxu0 %v39_v47 }
 0x10e   :  { %v279_v59 = vpop.f32.mrf.mxu0 }
 0x10f   :  { %v280_v2 = vadd.f32 %v279_v59, %v78_v61 }
 0x110   :  { %v281_v62 = vpop.f32.mrf.mxu0 }
 0x111   :  { %v282_v0 = vadd.f32 %v281_v62, %v82_v60  ;;  %v288_v8 = vmax.f32 %v280_v2, 0.0 }
 0x112   :  { %v283_v63 = vpop.f32.mrf.mxu0 }
 0x113   :  { %v284_v1 = vadd.f32 %v283_v63, %v78_v61  ;;  %v289_v6 = vmax.f32 %v282_v0, 0.0 }
 0x114   :  { %v285_v3 = vpop.f32.mrf.mxu0 }
 0x115   :  { %v286_v4 = vadd.f32 %v285_v3, %v82_v60  ;;  %v290_v5 = vmax.f32 %v284_v1, 0.0 }
 0x117   :  { %v291_v7 = vmax.f32 %v286_v4, 0.0  ;;  %v292_v10 = vpack.c.bf16 %v290_v5, %v288_v8 }
 0x119   :  { %v293_v9 = vpack.c.bf16 %v291_v7, %v289_v6 }
 0x11b   :  { %461 = vmatprep.mubr.bf16.mxu1 %v293_v9 }
 0x11c   :  { %462 = vmatmul.mubr.bf16.vlgmr.msra.gmra.mxu1 %v292_v10 }
 0x1dc   :  { %v543_v11 = vpop.f32.mrf.mxu1 }
 0x1de   :  { %v544_v13 = vpop.f32.mrf.mxu1 }
 0x1df   :  { %v545_v14 = vadd.f32 %v544_v13, %v543_v11 }
 0x1e0   :  { %v546_v15 = vpop.f32.mrf.mxu1 }
 0x1e1   :  { %v464_v16 = vadd.f32 %v545_v14, %v510_v12 }
 0x1e2   :  { %v547_v17 = vpop.f32.mrf.mxu1 }
 0x1e3   :  { %471 = vst.msk [vmem:[%s751_s5] sm:$0xff] %vm470_vm0, %v464_v16  ;;  %v548_v18 = vadd.f32 %v547_v17, %v546_v15 }
 0x1e5   :  { %v467_v19 = vadd.f32 %v548_v18, %v510_v12 }
 0x1e7   :  { %472 = vst.msk [vmem:[%s751_s5 + $0x8] sm:$0xff] %vm470_vm0, %v467_v19 }
 0x1e8   :  { %477 = vsyncpa [#allocation3], 1 }

</bundles_post_ra>
